<compile_context>
chip_gen: v5e
topology: v5e:2x2
jax: 0.10.0
libtpu: 0.0.40
codegen_flags: <defaults>
</compile_context>

<pallas_src>
import math
import jax
import jax.numpy as jnp
from jax.experimental import pallas as pl
from jax.experimental.pallas import tpu as pltpu


_SQRT_2_OVER_PI = math.sqrt(2.0 / math.pi)


def _gelu(v):
    # tanh-approx GELU (routes the transcendental to the EUP slot).
    return 0.5 * v * (1.0 + jnp.tanh(_SQRT_2_OVER_PI * (v + 0.044715 * v * v * v)))


def _head(x, w11_ref, b11_ref, w12_ref, b12_ref, w21_ref, b21_ref):
    """Shared block-1 + first half of block-2. x is f32 [tb, inp]."""
    h = _gelu(jnp.dot(x.astype(jnp.bfloat16), w11_ref[...],
                      preferred_element_type=jnp.float32) + b11_ref[...])
    h = _gelu(jnp.dot(h.astype(jnp.bfloat16), w12_ref[...],
                      preferred_element_type=jnp.float32) + b12_ref[...] + x)
    g = _gelu(jnp.dot(h.astype(jnp.bfloat16), w21_ref[...],
                      preferred_element_type=jnp.float32) + b21_ref[...])
    return h, g


def _kernel_fused_tail(x_ref, w11_ref, b11_ref, w12_ref, b12_ref,
                       w21_ref, b21_ref, w2c_ref, b2c_ref, o_ref):
    """Tail fused on the K axis: [g, h] @ [w22; wds] (used when inp == 128)."""
    h, g = _head(x_ref[...], w11_ref, b11_ref, w12_ref, b12_ref, w21_ref, b21_ref)
    cat = jnp.concatenate([g, h], axis=-1).astype(jnp.bfloat16)     # [tb, 2*inp]
    out = jnp.dot(cat, w2c_ref[...],
                  preferred_element_type=jnp.float32) + b2c_ref[...]
    o_ref[...] = _gelu(out).astype(o_ref.dtype)


def _kernel_split_tail(x_ref, w11_ref, b11_ref, w12_ref, b12_ref,
                       w21_ref, b21_ref, w22_ref, wds_ref, b2c_ref, o_ref):
    """Tail as two dots into one f32 accumulator (used when inp > 128)."""
    h, g = _head(x_ref[...], w11_ref, b11_ref, w12_ref, b12_ref, w21_ref, b21_ref)
    out = (jnp.dot(g.astype(jnp.bfloat16), w22_ref[...],
                   preferred_element_type=jnp.float32)
           + jnp.dot(h.astype(jnp.bfloat16), wds_ref[...],
                     preferred_element_type=jnp.float32)
           + b2c_ref[...])
    o_ref[...] = _gelu(out).astype(o_ref.dtype)


def _round_up(n, m):
    return ((n + m - 1) // m) * m


def _pad2(a, rows, cols):
    return jnp.pad(a, ((0, rows - a.shape[0]), (0, cols - a.shape[1])))


def _const_spec(a):
    # Whole-array, grid-invariant operand (weights / biases stay VMEM-resident).
    # index_map does not close over `a` -> no late-binding bug.
    return pl.BlockSpec(a.shape, lambda i: (0, 0))


def _choose_batch_tile(B, max_tile):
    """Multiple-of-8 batch tile minimizing padded-row waste; prefer >=2 grid
    steps (even count) so a 'parallel' grid shards across v7x's 2 TensorCores."""
    B8 = _round_up(B, 8)
    if B8 <= max_tile:
        if B8 >= 256:
            return _round_up((B8 + 1) // 2, 8)   # 2 grid steps for megacore
        return B8                                # tiny batch: single step
    best_key, best_tb = None, 8
    for tb in range(8, max_tile + 1, 8):
        Bp = _round_up(B8, tb)
        steps = Bp // tb
        # minimize total padded rows, then prefer even step counts, then big tiles
        key = (Bp, 0 if steps % 2 == 0 else 1, -tb)
        if best_key is None or key < best_key:
            best_key, best_tb = key, tb
    return best_tb


def residual_linear(x, params, *, max_batch_tile=512):
    """x: [B, in_features] f32; params: dict of pre-transposed f32 weights/biases."""
    B, in_f = x.shape
    out_f = params["w22"].shape[1]

    inp = _round_up(in_f, 128)          # lane-dense hidden width
    outp = _round_up(out_f, 128)        # lane-dense output width
    tb = _choose_batch_tile(B, max_batch_tile)
    Bp = _round_up(B, tb)

    fuse_tail = (inp == 128)            # K=2*inp=256 exactly fills the MXU

    # Zero-pad activations and parameters; cast weights to bf16 for the MXU.
    xp = _pad2(x, Bp, inp)
    w11 = _pad2(params["w11"], inp, inp).astype(jnp.bfloat16)
    w12 = _pad2(params["w12"], inp, inp).astype(jnp.bfloat16)
    w21 = _pad2(params["w21"], inp, inp).astype(jnp.bfloat16)
    w22 = _pad2(params["w22"], inp, outp).astype(jnp.bfloat16)
    wds = _pad2(params["wds"], inp, outp).astype(jnp.bfloat16)

    b11 = _pad2(params["b11"], 1, inp)
    b12 = _pad2(params["b12"], 1, inp)
    b21 = _pad2(params["b21"], 1, inp)
    b2c = _pad2(params["b22"] + params["bds"], 1, outp)

    if fuse_tail:
        kernel = _kernel_fused_tail
        tail_weights = (jnp.concatenate([w22, wds], axis=0),)      # [2*inp, outp]
    else:
        kernel = _kernel_split_tail
        tail_weights = (w22, wds)

    operands = (xp, w11, b11, w12, b12, w21, b21, *tail_weights, b2c)

    in_specs = [pl.BlockSpec((tb, inp), lambda i: (i, 0))]          # x: batch-tiled
    in_specs += [_const_spec(a) for a in operands[1:]]
    out_spec = pl.BlockSpec((tb, outp), lambda i: (i, 0))

    grid = (Bp // tb,)

    # ---- explicit VMEM budget (default scoped limit is far below physical) ----
    weight_bytes = 2 * (3 * inp * inp + 2 * inp * outp) * 2         # bf16, x2 buffering
    bias_bytes = 2 * (3 * inp + outp) * 4
    io_bytes = 2 * tb * inp * 4 + 2 * tb * outp * 4                 # double-buffered x/out
    act_bytes = 6 * tb * inp * 4                                    # live f32/bf16 temps
    vmem_need = weight_bytes + bias_bytes + io_bytes + act_bytes + (4 << 20)
    # Clamp to a value safe on every generation (v7x has only 64 MiB per TC).
    vmem_limit = max(32 << 20, min(vmem_need, 56 << 20))
    # TODO(synk): for very large feature dims, add a grid axis over inp/outp so
    # only a weight slice is VMEM-resident (and single-buffer the weights).

    flops = 2 * Bp * (3 * inp * inp + 2 * inp * outp)
    transcendentals = Bp * (3 * inp + outp)                         # tanh per element
    bytes_accessed = (Bp * inp * 4
                      + (3 * inp * inp + 2 * inp * outp) * 2
                      + (3 * inp + outp) * 4
                      + Bp * outp * 4)

    out_padded = pl.pallas_call(
        kernel,
        out_shape=jax.ShapeDtypeStruct((Bp, outp), jnp.float32),
        grid=grid,
        in_specs=in_specs,
        out_specs=out_spec,
        compiler_params=pltpu.CompilerParams(
            dimension_semantics=("parallel",),
            vmem_limit_bytes=int(vmem_limit),
        ),
        cost_estimate=pl.CostEstimate(
            flops=flops,
            transcendentals=transcendentals,
            bytes_accessed=bytes_accessed,
        ),
    )(*operands)

    return out_padded[:B, :out_f]


def init_params(key, in_features, out_features):
    """Deterministic init mimicking nn.Linear (uniform +/- 1/sqrt(fan_in)).
    Weights returned already transposed to [in, out]; biases as [1, out]."""
    def linear(k, fan_in, fan_out):
        kw, kb = jax.random.split(k)
        bound = 1.0 / math.sqrt(fan_in)
        w = jax.random.uniform(kw, (fan_in, fan_out), jnp.float32, -bound, bound)
        b = jax.random.uniform(kb, (1, fan_out), jnp.float32, -bound, bound)
        return w, b

    keys = jax.random.split(key, 5)
    w11, b11 = linear(keys[0], in_features, in_features)
    w12, b12 = linear(keys[1], in_features, in_features)
    w21, b21 = linear(keys[2], in_features, in_features)
    w22, b22 = linear(keys[3], in_features, out_features)
    wds, bds = linear(keys[4], in_features, out_features)
    return dict(w11=w11, b11=b11, w12=w12, b12=b12,
                w21=w21, b21=b21, w22=w22, b22=b22,
                wds=wds, bds=bds)


def residual_linear_ref(x, p):
    """Pure-JAX reference mirroring the kernel numerics:
    bf16-rounded matmul inputs, f32 accumulation, tanh-approx GELU in f32."""
    dot = lambda a, b: jnp.dot(a.astype(jnp.bfloat16), b.astype(jnp.bfloat16),
                               preferred_element_type=jnp.float32)
    h = _gelu(dot(x, p["w11"]) + p["b11"])
    h = _gelu(dot(h, p["w12"]) + p["b12"] + x)
    g = _gelu(dot(h, p["w21"]) + p["b21"])
    out = dot(g, p["w22"]) + p["b22"] + dot(h, p["wds"]) + p["bds"]
    return _gelu(out)


if __name__ == "__main__":
    key = jax.random.PRNGKey(0)

    # (in_features, out_features, batch):
    #   - fused-tail path (inp pads to 128), single grid step
    #   - fused-tail path, multi-step parallel grid (tile chooser picks tb=320)
    #   - split-tail path (inp pads to 256)
    configs = [(32, 16, 8), (32, 16, 640), (160, 48, 16)]

    for in_f, out_f, batch in configs:
        kcfg = jax.random.fold_in(key, 1000 * in_f + batch)
        kp, kx = jax.random.split(kcfg)
        params = init_params(kp, in_f, out_f)
        x = jax.random.normal(kx, (batch, in_f), jnp.float32)

        out = jax.block_until_ready(residual_linear(x, params))
        ref = residual_linear_ref(x, params)

        assert out.shape == (batch, out_f), f"bad shape {out.shape}"
        assert jnp.allclose(out, ref, atol=1e-2, rtol=1e-2), \
            f"mismatch at cfg=({in_f},{out_f},{batch})"

    print("KERNEL_OK")
</pallas_src>

<mosaic_0001>
module attributes {stable_mosaic.version = 11 : i64} {
  func.func @_kernel_fused_tail(%arg0: i32, %arg1: memref<8x128xf32, #tpu.memory_space<vmem>>, %arg2: memref<128x128xbf16, #tpu.memory_space<vmem>>, %arg3: memref<1x128xf32, #tpu.memory_space<vmem>>, %arg4: memref<128x128xbf16, #tpu.memory_space<vmem>>, %arg5: memref<1x128xf32, #tpu.memory_space<vmem>>, %arg6: memref<128x128xbf16, #tpu.memory_space<vmem>>, %arg7: memref<1x128xf32, #tpu.memory_space<vmem>>, %arg8: memref<256x128xbf16, #tpu.memory_space<vmem>>, %arg9: memref<1x128xf32, #tpu.memory_space<vmem>>, %arg10: memref<8x128xf32, #tpu.memory_space<vmem>>) attributes {dimension_semantics = [#tpu.dimension_semantics<parallel>], iteration_bounds = array<i64: 1>, scalar_prefetch = 0 : i64, scratch_operands = 0 : i64, tpu.core_type = #tpu.core_type<tc>, window_params = [{transform_indices = @transform_0, window_bounds = array<i64: 8, 128>}, {pipeline_mode = #tpu.pipeline_mode<synchronous>, transform_indices = @transform_1, window_bounds = array<i64: 128, 128>}, {pipeline_mode = #tpu.pipeline_mode<synchronous>, transform_indices = @transform_2, window_bounds = array<i64: 1, 128>}, {pipeline_mode = #tpu.pipeline_mode<synchronous>, transform_indices = @transform_3, window_bounds = array<i64: 128, 128>}, {pipeline_mode = #tpu.pipeline_mode<synchronous>, transform_indices = @transform_4, window_bounds = array<i64: 1, 128>}, {pipeline_mode = #tpu.pipeline_mode<synchronous>, transform_indices = @transform_5, window_bounds = array<i64: 128, 128>}, {pipeline_mode = #tpu.pipeline_mode<synchronous>, transform_indices = @transform_6, window_bounds = array<i64: 1, 128>}, {pipeline_mode = #tpu.pipeline_mode<synchronous>, transform_indices = @transform_7, window_bounds = array<i64: 256, 128>}, {pipeline_mode = #tpu.pipeline_mode<synchronous>, transform_indices = @transform_8, window_bounds = array<i64: 1, 128>}, {transform_indices = @transform_9, window_bounds = array<i64: 8, 128>}]} {
    %c0 = arith.constant 0 : index
    %c0_0 = arith.constant 0 : index
    %0 = vector.load %arg1[%c0, %c0_0] : memref<8x128xf32, #tpu.memory_space<vmem>>, vector<8x128xf32>
    %1 = arith.truncf %0 : vector<8x128xf32> to vector<8x128xbf16>
    %c0_1 = arith.constant 0 : index
    %c0_2 = arith.constant 0 : index
    %2 = vector.load %arg2[%c0_1, %c0_2] : memref<128x128xbf16, #tpu.memory_space<vmem>>, vector<128x128xbf16>
    %cst = arith.constant dense<0.000000e+00> : vector<8x128xf32>
    %3 = tpu.matmul %1, %2, %cst {dimension_numbers = #tpu.dot_dimension_numbers<[1], [0], [0], [1], [0, 0, 1, 1], [], []>} : vector<8x128xbf16>, vector<128x128xbf16>, vector<8x128xf32> -> vector<8x128xf32>
    %c0_3 = arith.constant 0 : index
    %c0_4 = arith.constant 0 : index
    %4 = vector.load %arg3[%c0_3, %c0_4] : memref<1x128xf32, #tpu.memory_space<vmem>>, vector<1x128xf32>
    %5 = vector.broadcast %4 : vector<1x128xf32> to vector<8x128xf32>
    %6 = arith.addf %3, %5 : vector<8x128xf32>
    %cst_5 = arith.constant 5.000000e-01 : f32
    %7 = vector.broadcast %cst_5 : f32 to vector<8x128xf32>
    %8 = arith.mulf %7, %6 : vector<8x128xf32>
    %cst_6 = arith.constant 4.471500e-02 : f32
    %9 = vector.broadcast %cst_6 : f32 to vector<8x128xf32>
    %10 = arith.mulf %9, %6 : vector<8x128xf32>
    %11 = arith.mulf %10, %6 : vector<8x128xf32>
    %12 = arith.mulf %11, %6 : vector<8x128xf32>
    %13 = arith.addf %6, %12 : vector<8x128xf32>
    %cst_7 = arith.constant 0.797884583 : f32
    %14 = vector.broadcast %cst_7 : f32 to vector<8x128xf32>
    %15 = arith.mulf %14, %13 : vector<8x128xf32>
    %16 = math.tanh %15 : vector<8x128xf32>
    %cst_8 = arith.constant 1.000000e+00 : f32
    %17 = vector.broadcast %cst_8 : f32 to vector<8x128xf32>
    %18 = arith.addf %17, %16 : vector<8x128xf32>
    %19 = arith.mulf %8, %18 : vector<8x128xf32>
    %20 = arith.truncf %19 : vector<8x128xf32> to vector<8x128xbf16>
    %c0_9 = arith.constant 0 : index
    %c0_10 = arith.constant 0 : index
    %21 = vector.load %arg4[%c0_9, %c0_10] : memref<128x128xbf16, #tpu.memory_space<vmem>>, vector<128x128xbf16>
    %cst_11 = arith.constant dense<0.000000e+00> : vector<8x128xf32>
    %22 = tpu.matmul %20, %21, %cst_11 {dimension_numbers = #tpu.dot_dimension_numbers<[1], [0], [0], [1], [0, 0, 1, 1], [], []>} : vector<8x128xbf16>, vector<128x128xbf16>, vector<8x128xf32> -> vector<8x128xf32>
    %c0_12 = arith.constant 0 : index
    %c0_13 = arith.constant 0 : index
    %23 = vector.load %arg5[%c0_12, %c0_13] : memref<1x128xf32, #tpu.memory_space<vmem>>, vector<1x128xf32>
    %24 = vector.broadcast %23 : vector<1x128xf32> to vector<8x128xf32>
    %25 = arith.addf %22, %24 : vector<8x128xf32>
    %26 = arith.addf %25, %0 : vector<8x128xf32>
    %cst_14 = arith.constant 5.000000e-01 : f32
    %27 = vector.broadcast %cst_14 : f32 to vector<8x128xf32>
    %28 = arith.mulf %27, %26 : vector<8x128xf32>
    %cst_15 = arith.constant 4.471500e-02 : f32
    %29 = vector.broadcast %cst_15 : f32 to vector<8x128xf32>
    %30 = arith.mulf %29, %26 : vector<8x128xf32>
    %31 = arith.mulf %30, %26 : vector<8x128xf32>
    %32 = arith.mulf %31, %26 : vector<8x128xf32>
    %33 = arith.addf %26, %32 : vector<8x128xf32>
    %cst_16 = arith.constant 0.797884583 : f32
    %34 = vector.broadcast %cst_16 : f32 to vector<8x128xf32>
    %35 = arith.mulf %34, %33 : vector<8x128xf32>
    %36 = math.tanh %35 : vector<8x128xf32>
    %cst_17 = arith.constant 1.000000e+00 : f32
    %37 = vector.broadcast %cst_17 : f32 to vector<8x128xf32>
    %38 = arith.addf %37, %36 : vector<8x128xf32>
    %39 = arith.mulf %28, %38 : vector<8x128xf32>
    %40 = arith.truncf %39 : vector<8x128xf32> to vector<8x128xbf16>
    %c0_18 = arith.constant 0 : index
    %c0_19 = arith.constant 0 : index
    %41 = vector.load %arg6[%c0_18, %c0_19] : memref<128x128xbf16, #tpu.memory_space<vmem>>, vector<128x128xbf16>
    %cst_20 = arith.constant dense<0.000000e+00> : vector<8x128xf32>
    %42 = tpu.matmul %40, %41, %cst_20 {dimension_numbers = #tpu.dot_dimension_numbers<[1], [0], [0], [1], [0, 0, 1, 1], [], []>} : vector<8x128xbf16>, vector<128x128xbf16>, vector<8x128xf32> -> vector<8x128xf32>
    %c0_21 = arith.constant 0 : index
    %c0_22 = arith.constant 0 : index
    %43 = vector.load %arg7[%c0_21, %c0_22] : memref<1x128xf32, #tpu.memory_space<vmem>>, vector<1x128xf32>
    %44 = vector.broadcast %43 : vector<1x128xf32> to vector<8x128xf32>
    %45 = arith.addf %42, %44 : vector<8x128xf32>
    %cst_23 = arith.constant 5.000000e-01 : f32
    %46 = vector.broadcast %cst_23 : f32 to vector<8x128xf32>
    %47 = arith.mulf %46, %45 : vector<8x128xf32>
    %cst_24 = arith.constant 4.471500e-02 : f32
    %48 = vector.broadcast %cst_24 : f32 to vector<8x128xf32>
    %49 = arith.mulf %48, %45 : vector<8x128xf32>
    %50 = arith.mulf %49, %45 : vector<8x128xf32>
    %51 = arith.mulf %50, %45 : vector<8x128xf32>
    %52 = arith.addf %45, %51 : vector<8x128xf32>
    %cst_25 = arith.constant 0.797884583 : f32
    %53 = vector.broadcast %cst_25 : f32 to vector<8x128xf32>
    %54 = arith.mulf %53, %52 : vector<8x128xf32>
    %55 = math.tanh %54 : vector<8x128xf32>
    %cst_26 = arith.constant 1.000000e+00 : f32
    %56 = vector.broadcast %cst_26 : f32 to vector<8x128xf32>
    %57 = arith.addf %56, %55 : vector<8x128xf32>
    %58 = arith.mulf %47, %57 : vector<8x128xf32>
    %59 = tpu.concatenate %58, %39 in 1 : vector<8x128xf32>, vector<8x128xf32> -> vector<8x256xf32>
    %60 = arith.truncf %59 : vector<8x256xf32> to vector<8x256xbf16>
    %c0_27 = arith.constant 0 : index
    %c0_28 = arith.constant 0 : index
    %61 = vector.load %arg8[%c0_27, %c0_28] : memref<256x128xbf16, #tpu.memory_space<vmem>>, vector<256x128xbf16>
    %cst_29 = arith.constant dense<0.000000e+00> : vector<8x128xf32>
    %62 = tpu.matmul %60, %61, %cst_29 {dimension_numbers = #tpu.dot_dimension_numbers<[1], [0], [0], [1], [0, 0, 1, 1], [], []>} : vector<8x256xbf16>, vector<256x128xbf16>, vector<8x128xf32> -> vector<8x128xf32>
    %c0_30 = arith.constant 0 : index
    %c0_31 = arith.constant 0 : index
    %63 = vector.load %arg9[%c0_30, %c0_31] : memref<1x128xf32, #tpu.memory_space<vmem>>, vector<1x128xf32>
    %64 = vector.broadcast %63 : vector<1x128xf32> to vector<8x128xf32>
    %65 = arith.addf %62, %64 : vector<8x128xf32>
    %cst_32 = arith.constant 5.000000e-01 : f32
    %66 = vector.broadcast %cst_32 : f32 to vector<8x128xf32>
    %67 = arith.mulf %66, %65 : vector<8x128xf32>
    %cst_33 = arith.constant 4.471500e-02 : f32
    %68 = vector.broadcast %cst_33 : f32 to vector<8x128xf32>
    %69 = arith.mulf %68, %65 : vector<8x128xf32>
    %70 = arith.mulf %69, %65 : vector<8x128xf32>
    %71 = arith.mulf %70, %65 : vector<8x128xf32>
    %72 = arith.addf %65, %71 : vector<8x128xf32>
    %cst_34 = arith.constant 0.797884583 : f32
    %73 = vector.broadcast %cst_34 : f32 to vector<8x128xf32>
    %74 = arith.mulf %73, %72 : vector<8x128xf32>
    %75 = math.tanh %74 : vector<8x128xf32>
    %cst_35 = arith.constant 1.000000e+00 : f32
    %76 = vector.broadcast %cst_35 : f32 to vector<8x128xf32>
    %77 = arith.addf %76, %75 : vector<8x128xf32>
    %78 = arith.mulf %67, %77 : vector<8x128xf32>
    %c0_36 = arith.constant 0 : index
    %c0_37 = arith.constant 0 : index
    %79 = vector.load %arg10[%c0_36, %c0_37] : memref<8x128xf32, #tpu.memory_space<vmem>>, vector<8x128xf32>
    tpu.vector_store %arg10[%c0_36, %c0_37], %78 {strides = array<i32>} : memref<8x128xf32, #tpu.memory_space<vmem>>, vector<8x128xf32>,
    return
  }
  func.func @transform_0(%arg0: i32) -> (i32, i32) {
    %c0_i32 = arith.constant 0 : i32
    %c0_i32_0 = arith.constant 0 : i32
    return %arg0, %c0_i32 : i32, i32
  }
  func.func @transform_1(%arg0: i32) -> (i32, i32) {
    %c0_i32 = arith.constant 0 : i32
    %c0_i32_0 = arith.constant 0 : i32
    %c0_i32_1 = arith.constant 0 : i32
    return %c0_i32, %c0_i32_0 : i32, i32
  }
  func.func @transform_2(%arg0: i32) -> (i32, i32) {
    %c0_i32 = arith.constant 0 : i32
    %c0_i32_0 = arith.constant 0 : i32
    %c0_i32_1 = arith.constant 0 : i32
    return %c0_i32, %c0_i32_0 : i32, i32
  }
  func.func @transform_3(%arg0: i32) -> (i32, i32) {
    %c0_i32 = arith.constant 0 : i32
    %c0_i32_0 = arith.constant 0 : i32
    %c0_i32_1 = arith.constant 0 : i32
    return %c0_i32, %c0_i32_0 : i32, i32
  }
  func.func @transform_4(%arg0: i32) -> (i32, i32) {
    %c0_i32 = arith.constant 0 : i32
    %c0_i32_0 = arith.constant 0 : i32
    %c0_i32_1 = arith.constant 0 : i32
    return %c0_i32, %c0_i32_0 : i32, i32
  }
  func.func @transform_5(%arg0: i32) -> (i32, i32) {
    %c0_i32 = arith.constant 0 : i32
    %c0_i32_0 = arith.constant 0 : i32
    %c0_i32_1 = arith.constant 0 : i32
    return %c0_i32, %c0_i32_0 : i32, i32
  }
  func.func @transform_6(%arg0: i32) -> (i32, i32) {
    %c0_i32 = arith.constant 0 : i32
    %c0_i32_0 = arith.constant 0 : i32
    %c0_i32_1 = arith.constant 0 : i32
    return %c0_i32, %c0_i32_0 : i32, i32
  }
  func.func @transform_7(%arg0: i32) -> (i32, i32) {
    %c0_i32 = arith.constant 0 : i32
    %c0_i32_0 = arith.constant 0 : i32
    %c0_i32_1 = arith.constant 0 : i32
    return %c0_i32, %c0_i32_0 : i32, i32
  }
  func.func @transform_8(%arg0: i32) -> (i32, i32) {
    %c0_i32 = arith.constant 0 : i32
    %c0_i32_0 = arith.constant 0 : i32
    %c0_i32_1 = arith.constant 0 : i32
    return %c0_i32, %c0_i32_0 : i32, i32
  }
  func.func @transform_9(%arg0: i32) -> (i32, i32) {
    %c0_i32 = arith.constant 0 : i32
    %c0_i32_0 = arith.constant 0 : i32
    return %arg0, %c0_i32 : i32, i32
  }
}

</mosaic_0001>

<bundles_post_ra>
// kernel: tpu_custom_call.1
= control target key start
LH: loop header
LB: loop body
LE: loop exit
PB: predicated region body
PF: predicated region fallthrough
CT: control target
= control target key end

     0   :  { %14 = vsyncpa [#allocation3], 0  ;;  %s1037_s0 = inlined_call_operand.hbm [shape: f32[8,128], index: 0, kind: input, shape index: {}]   ;;  %s1038_s1 = inlined_call_operand.hbm [shape: bf16[128,128], index: 1, kind: input, shape index: {}]   ;;  %s1039_s2 = inlined_call_operand.vmem [shape: f32[1,128], index: 2, kind: input, shape index: {}]   ;;  %s1040_s3 = inlined_call_operand.hbm [shape: bf16[128,128], index: 3, kind: input, shape index: {}]   ;;  %s1041_s4 = inlined_call_operand.vmem [shape: f32[1,128], index: 4, kind: input, shape index: {}]   ;;  %s1042_s5 = inlined_call_operand.hbm [shape: bf16[128,128], index: 5, kind: input, shape index: {}]   ;;  %s1043_s6 = inlined_call_operand.vmem [shape: f32[1,128], index: 6, kind: input, shape index: {}]   ;;  %s1044_s7 = inlined_call_operand.hbm [shape: bf16[256,128], index: 7, kind: input, shape index: {}]   ;;  %s1045_s8 = inlined_call_operand.vmem [shape: f32[1,128], index: 8, kind: input, shape index: {}]   ;;  %s1046_s9 = inlined_call_operand.hbm [shape: f32[8,128], index: 9, kind: output, shape index: {}]  }
   0x1   :  { %15 = vsyncpa [#allocation6], 0 }
   0x2   :  { %16 = vsyncpa [#allocation9], 0  ;;  %s33_s11 = sshll.u32 %s1038_s1, 4  ;;  %s34_s11 = int_to_ptr.hbm [resolvable:$true] %s33_s11 }
   0x3   :  { %17 = vsyncpa [#allocation4], 0  ;;  %s944_s12 = smov [#allocation5]   ;;  %s63_s16 = sshll.u32 %s1042_s5, 4  ;;  %s64_s16 = int_to_ptr.hbm [resolvable:$true] %s63_s16 }
   0x4   :  { %s35_s13 = sshll.u32 %s944_s12, 4  ;;  %s945_s17 = smov 64   ;;  %s36_s13 = int_to_ptr.vmem [resolvable:$true] %s35_s13 }
   0x5   :  { %s946_s18 = smov 4   ;;  %s947_s19 = smov [#allocation8]  }
   0x6   :  { %41 = dma.hbm_to_vmem [thread:$0]  %s34_s11, 1024, %s36_s13, [#allocation6], %s945_s17, %s945_s17, %s946_s18  }
   0x7   :  { %s65_s20 = sshll.u32 %s947_s19, 4  ;;  %s23_s23 = sshll.u32 %s1037_s0, 4  ;;  %s66_s20 = int_to_ptr.vmem [resolvable:$true] %s65_s20  ;;  %s24_s23 = int_to_ptr.hbm [resolvable:$true] %s23_s23 }
   0x8   :  { %71 = dma.hbm_to_vmem [thread:$0]  %s64_s16, 1024, %s66_s20, [#allocation9], %s945_s17, %s945_s17, %s946_s18  }
   0x9   :  { %s48_s25 = sshll.u32 %s1040_s3, 4  ;;  %s948_s26 = smov [#allocation2]   ;;  %s49_s25 = int_to_ptr.hbm [resolvable:$true] %s48_s25 }
   0xa   :  { %s25_s27 = sshll.u32 %s948_s26, 4  ;;  %s949_s5 = smov [#allocation7]   ;;  %s26_s27 = int_to_ptr.vmem [resolvable:$true] %s25_s27 }
   0xb   :  { %28 = dma.hbm_to_vmem [thread:$0]  %s24_s23, 128, %s26_s27, [#allocation3]  }
   0xc   :  { %s50_s28 = sshll.u32 %s949_s5, 4  ;;  %s78_s10 = sshll.u32 %s1044_s7, 4  ;;  %s51_s28 = int_to_ptr.vmem [resolvable:$true] %s50_s28  ;;  %s79_s10 = int_to_ptr.hbm [resolvable:$true] %s78_s10 }
   0xd   :  { %56 = dma.hbm_to_vmem [thread:$0]  %s49_s25, 1024, %s51_s28, [#allocation6], %s945_s17, %s945_s17, %s946_s18  }
   0xe   :  { %s950_s0 = smov [#allocation10]  }
   0xf   :  { %s80_s11 = sshll.u32 %s950_s0, 4  ;;  %s81_s11 = int_to_ptr.vmem [resolvable:$true] %s80_s11 }
  0x10   :  { %86 = dma.hbm_to_vmem [thread:$0]  %s79_s10, 2048, %s81_s11, [#allocation9], %s945_s17, %s945_s17, %s946_s18  }
  0x11   :  { %936 = dma.done.wait [#allocation3], 128  }
  0x12   :  { %937 = vsyncadd [#allocation3], 4294967168 }
  0x13   :  { %938 = dma.done.wait [#allocation6], 2048  }
  0x14   :  { %939 = vsyncadd [#allocation6], 4294965248 }
  0x15   :  { %940 = dma.done.wait [#allocation9], 3072  }
  0x16   :  { %941 = vsyncadd [#allocation9], 4294964224  ;;  %v739_v0 = vld [vmem:[#allocation5 + $0x38] sm:$0xff]  ;;  %v738_v1 = vld [vmem:[#allocation5 + $0x30] sm:$0xff]  ;;  %s560_s19 = sshll.u32 %s1046_s9, 4  ;;  %s561_s19 = int_to_ptr.hbm [resolvable:$true] %s560_s19 }
  0x17   :  { %179 = vmatpush.bf16.msra.mxu0 %v739_v0  ;;  %v747_v2 = vld [vmem:[#allocation7 + $0x38] sm:$0xff]  ;;  %v746_v3 = vld [vmem:[#allocation7 + $0x30] sm:$0xff]  ;;  %v737_v4 = vld [vmem:[#allocation5 + $0x28] sm:$0xff] }
  0x18   :  { %270 = vmatpush.bf16.msra.mxu1 %v747_v2  ;;  %v736_v5 = vld [vmem:[#allocation5 + $0x20] sm:$0xff]  ;;  %v735_v6 = vld [vmem:[#allocation5 + $0x18] sm:$0xff]  ;;  %v734_v7 = vld [vmem:[#allocation5 + $0x10] sm:$0xff] }
  0x19   :  { %v733_v8 = vld [vmem:[#allocation5 + $0x8] sm:$0xff]  ;;  %v732_v9 = vld [vmem:[#allocation5] sm:$0xff]  ;;  %v1017_v10 = vld [vmem:[#allocation2] sm:$0xff] }
  0x1a   :  { %v110_v11 = vpack.c.bf16 %v1017_v10, %v1017_v10  ;;  %v745_v12 = vld [vmem:[#allocation7 + $0x28] sm:$0xff]  ;;  %v744_v13 = vld [vmem:[#allocation7 + $0x20] sm:$0xff]  ;;  %v743_v14 = vld [vmem:[#allocation7 + $0x18] sm:$0xff] }
  0x1b   :  { %180 = vmatpush.bf16.msra.mxu0 %v738_v1  ;;  %v742_v15 = vld [vmem:[#allocation7 + $0x10] sm:$0xff]  ;;  %v741_v16 = vld [vmem:[#allocation7 + $0x8] sm:$0xff]  ;;  %v740_v17 = vld [vmem:[#allocation7] sm:$0xff] }
  0x1c   :  { %271 = vmatpush.bf16.msra.mxu1 %v746_v3  ;;  %v755_v18 = vld [vmem:[#allocation8 + $0x38] sm:$0xff]  ;;  %v754_v34 = vld [vmem:[#allocation8 + $0x30] sm:$0xff]  ;;  %v753_v36 = vld [vmem:[#allocation8 + $0x28] sm:$0xff] }
  0x1d   :  { %v771_v19 = vld [vmem:[#allocation10 + $0x78] sm:$0xff]  ;;  %362 = vmatpush.bf16.msra.mxu2 %v755_v18  ;;  %v770_v35 = vld [vmem:[#allocation10 + $0x70] sm:$0xff]  ;;  %v769_v37 = vld [vmem:[#allocation10 + $0x68] sm:$0xff] }
  0x1e   :  { %v780_v20 = vld [vmem:[%s1039_s2] ss:$0 sm:$0xff]  ;;  %v752_v38 = vld [vmem:[#allocation8 + $0x20] sm:$0xff]  ;;  %v750_v42 = vld [vmem:[#allocation8 + $0x10] sm:$0xff] }
  0x1f   :  { %181 = vmatpush.bf16.msra.mxu0 %v737_v4  ;;  %v768_v39 = vld [vmem:[#allocation10 + $0x60] sm:$0xff]  ;;  %v751_v40 = vld [vmem:[#allocation8 + $0x18] sm:$0xff]  ;;  %v766_v43 = vld [vmem:[#allocation10 + $0x50] sm:$0xff] }
  0x20   :  { %272 = vmatpush.bf16.msra.mxu1 %v745_v12  ;;  %v767_v41 = vld [vmem:[#allocation10 + $0x58] sm:$0xff]  ;;  %v749_v44 = vld [vmem:[#allocation8 + $0x8] sm:$0xff]  ;;  %v748_v46 = vld [vmem:[#allocation8] sm:$0xff] }
  0x21   :  { %363 = vmatpush.bf16.msra.mxu2 %v754_v34  ;;  %v765_v45 = vld [vmem:[#allocation10 + $0x48] sm:$0xff]  ;;  %v764_v47 = vld [vmem:[#allocation10 + $0x40] sm:$0xff]  ;;  %v781_v48 = vld [vmem:[%s1041_s4] ss:$0 sm:$0xff] }
  0x22   :  { %v763_v63 = vld [vmem:[#allocation10 + $0x38] sm:$0xff]  ;;  %v762_v0 = vld [vmem:[#allocation10 + $0x30] sm:$0xff]  ;;  %v761_v1 = vld [vmem:[#allocation10 + $0x28] sm:$0xff] }
  0x23   :  { %182 = vmatpush.bf16.msra.mxu0 %v736_v5  ;;  %517 = vmatpush.bf16.msra.mxu3 %v763_v63  ;;  %v760_v2 = vld [vmem:[#allocation10 + $0x20] sm:$0xff]  ;;  %v759_v3 = vld [vmem:[#allocation10 + $0x18] sm:$0xff]  ;;  %v758_v4 = vld [vmem:[#allocation10 + $0x10] sm:$0xff] }
  0x24   :  { %273 = vmatpush.bf16.msra.mxu1 %v744_v13  ;;  %v757_v5 = vld [vmem:[#allocation10 + $0x8] sm:$0xff] }
  0x25   :  { %364 = vmatpush.bf16.msra.mxu2 %v753_v36 }
  0x27   :  { %183 = vmatpush.bf16.msra.mxu0 %v735_v6  ;;  %518 = vmatpush.bf16.msra.mxu3 %v762_v0  ;;  %v756_v6 = vld [vmem:[#allocation10] sm:$0xff] }
  0x28   :  { %274 = vmatpush.bf16.msra.mxu1 %v743_v14 }
  0x29   :  { %365 = vmatpush.bf16.msra.mxu2 %v752_v38 }
  0x2b   :  { %184 = vmatpush.bf16.msra.mxu0 %v734_v7  ;;  %519 = vmatpush.bf16.msra.mxu3 %v761_v1 }
  0x2c   :  { %275 = vmatpush.bf16.msra.mxu1 %v742_v15 }
  0x2d   :  { %366 = vmatpush.bf16.msra.mxu2 %v751_v40 }
  0x2f   :  { %185 = vmatpush.bf16.msra.mxu0 %v733_v8  ;;  %520 = vmatpush.bf16.msra.mxu3 %v760_v2  ;;  %v782_v8 = vld [vmem:[%s1043_s6] ss:$0 sm:$0xff]  ;;  %s951_s6 = smov [#allocation11]  }
  0x30   :  { %276 = vmatpush.bf16.msra.mxu1 %v741_v16  ;;  %s558_s16 = sshll.u32 %s951_s6, 4  ;;  %s559_s16 = int_to_ptr.vmem [resolvable:$true] %s558_s16 }
  0x31   :  { %367 = vmatpush.bf16.msra.mxu2 %v750_v42 }
  0x33   :  { %186 = vmatpush.bf16.msra.mxu0 %v732_v9  ;;  %521 = vmatpush.bf16.msra.mxu3 %v759_v3 }
  0x34   :  { %277 = vmatpush.bf16.msra.mxu1 %v740_v17 }
  0x35   :  { %368 = vmatpush.bf16.msra.mxu2 %v749_v44 }
  0x36   :  { %187 = vmatmul.bf16.vlgmr.msra.gmra.mxu0 %v110_v11 }
  0x37   :  { %530 = vmatpush.bf16.msrb.mxu0 %v771_v19  ;;  %522 = vmatpush.bf16.msra.mxu3 %v758_v4 }
  0x39   :  { %369 = vmatpush.bf16.msra.mxu2 %v748_v46 }
  0x3b   :  { %531 = vmatpush.bf16.msrb.mxu0 %v770_v35  ;;  %523 = vmatpush.bf16.msra.mxu3 %v757_v5 }
  0x3f   :  { %532 = vmatpush.bf16.msrb.mxu0 %v769_v37  ;;  %524 = vmatpush.bf16.msra.mxu3 %v756_v6 }
  0x43   :  { %533 = vmatpush.bf16.msrb.mxu0 %v768_v39 }
  0x47   :  { %534 = vmatpush.bf16.msrb.mxu0 %v767_v41 }
  0x4b   :  { %535 = vmatpush.bf16.msrb.mxu0 %v766_v43 }
  0x4f   :  { %536 = vmatpush.bf16.msrb.mxu0 %v765_v45 }
  0x53   :  { %537 = vmatpush.bf16.msrb.mxu0 %v764_v47 }
  0xb3   :  { %v188_v21 = vpop.f32.mrf.mxu0 }
  0xb4   :  { %v189_v22 = vadd.f32 %v780_v20, %v188_v21 }
  0xb6   :  { %v193_v23 = vmul.f32 0.044715, %v189_v22  ;;  %v192_v30 = vmul.f32 0.5, %v189_v22 }
  0xb8   :  { %v194_v24 = vmul.f32 %v193_v23, %v189_v22  ;;  %v783_v23 = vld [vmem:[%s1045_s8] ss:$0 sm:$0xff] }
  0xba   :  { %v195_v25 = vmul.f32 %v194_v24, %v189_v22 }
  0xbb   :  { %v190_v26 = vpop.f32.mrf.mxu0 }
  0xbc   :  { %v196_v27 = vadd.f32 %v195_v25, %v189_v22 }
  0xbe   :  { %v197_v28 = vmul.f32 0.7978846, %v196_v27 }
  0xc0   :  { %784 = vtanh.f32 %v197_v28 }
  0xc6   :  { %v785_v29 = vpop.eup %784 }
  0xc7   :  { %v199_v31 = vadd.f32 1.0, %v785_v29 }
  0xc9   :  { %v200_v32 = vmul.f32 %v199_v31, %v192_v30 }
  0xcb   :  { %v201_v33 = vpack.c.bf16 %v200_v32, %v200_v32 }
  0xcd   :  { %278 = vmatmul.bf16.vlgmr.msra.gmra.mxu1 %v201_v33 }
 0x14a   :  { %v279_v49 = vpop.f32.mrf.mxu1 }
 0x14b   :  { %v280_v50 = vadd.f32 %v781_v48, %v279_v49 }
 0x14d   :  { %v283_v51 = vadd.f32 %v280_v50, %v1017_v10 }
 0x14f   :  { %v285_v52 = vmul.f32 0.044715, %v283_v51  ;;  %v284_v59 = vmul.f32 0.5, %v283_v51 }
 0x151   :  { %v286_v53 = vmul.f32 %v285_v52, %v283_v51 }
 0x152   :  { %v281_v54 = vpop.f32.mrf.mxu1 }
 0x153   :  { %v287_v55 = vmul.f32 %v286_v53, %v283_v51 }
 0x155   :  { %v288_v56 = vadd.f32 %v287_v55, %v283_v51 }
 0x157   :  { %v289_v57 = vmul.f32 0.7978846, %v288_v56 }
 0x159   :  { %786 = vtanh.f32 %v289_v57 }
 0x15f   :  { %v787_v58 = vpop.eup %786 }
 0x160   :  { %v291_v60 = vadd.f32 1.0, %v787_v58 }
 0x162   :  { %v292_v61 = vmul.f32 %v291_v60, %v284_v59 }
 0x164   :  { %v293_v62 = vpack.c.bf16 %v292_v61, %v292_v61 }
 0x166   :  { %370 = vmatmul.bf16.vlgmr.msra.gmra.mxu2 %v293_v62  ;;  %538 = vmatmul.bf16.vlgmr.msrb.gmra.mxu0 %v293_v62 }
 0x1e3   :  { %v539_v7 = vpop.f32.mrf.mxu0 }
 0x1e9   :  { %v371_v9 = vpop.f32.mrf.mxu2 }
 0x1ea   :  { %v372_v10 = vadd.f32 %v782_v8, %v371_v9 }
 0x1eb   :  { %v541_v11 = vpop.f32.mrf.mxu0 }
 0x1ec   :  { %v376_v12 = vmul.f32 0.044715, %v372_v10  ;;  %v375_v19 = vmul.f32 0.5, %v372_v10 }
 0x1ee   :  { %v377_v13 = vmul.f32 %v376_v12, %v372_v10 }
 0x1f0   :  { %v378_v14 = vmul.f32 %v377_v13, %v372_v10 }
 0x1f1   :  { %v373_v15 = vpop.f32.mrf.mxu2 }
 0x1f2   :  { %v379_v16 = vadd.f32 %v378_v14, %v372_v10 }
 0x1f4   :  { %v380_v17 = vmul.f32 0.7978846, %v379_v16 }
 0x1f6   :  { %788 = vtanh.f32 %v380_v17 }
 0x1fc   :  { %v789_v18 = vpop.eup %788 }
 0x1fd   :  { %v382_v20 = vadd.f32 1.0, %v789_v18 }
 0x1ff   :  { %v383_v21 = vmul.f32 %v382_v20, %v375_v19 }
 0x201   :  { %v384_v22 = vpack.c.bf16 %v383_v21, %v383_v21 }
 0x203   :  { %525 = vmatmul.bf16.vlgmr.msra.gmra.mxu3 %v384_v22 }
 0x286   :  { %v526_v24 = vpop.f32.mrf.mxu3 }
 0x287   :  { %v527_v25 = vadd.f32 %v783_v23, %v526_v24 }
 0x289   :  { %v540_v26 = vadd.f32 %v539_v7, %v527_v25 }
 0x28b   :  { %v544_v27 = vmul.f32 0.044715, %v540_v26  ;;  %v543_v34 = vmul.f32 0.5, %v540_v26 }
 0x28d   :  { %v545_v28 = vmul.f32 %v544_v27, %v540_v26 }
 0x28e   :  { %v528_v29 = vpop.f32.mrf.mxu3 }
 0x28f   :  { %v546_v30 = vmul.f32 %v545_v28, %v540_v26 }
 0x291   :  { %v547_v31 = vadd.f32 %v546_v30, %v540_v26 }
 0x293   :  { %v548_v32 = vmul.f32 0.7978846, %v547_v31 }
 0x295   :  { %790 = vtanh.f32 %v548_v32 }
 0x29b   :  { %v791_v33 = vpop.eup %790 }
 0x29c   :  { %v550_v35 = vadd.f32 1.0, %v791_v33 }
 0x29e   :  { %v551_v36 = vmul.f32 %v550_v35, %v543_v34 }
 0x2a0   :  { %552 = vst [vmem:[#allocation11] sm:$0xff] %v551_v36 }
 0x2a1   :  { %563 = dma.vmem_to_hbm [thread:$0]  %s559_s16, 128, %s561_s19, [#allocation4]  }
 0x2a2   :  { %942 = dma.done.wait [#allocation4], 128  }
 0x2a3   :  { %943 = vsyncadd [#allocation4], 4294967168 }
 0x2a4   :  { %568 = vsyncpa [#allocation3], 1 }
 0x2a5   :  { %569 = vsyncpa [#allocation6], 1 }
 0x2a6   :  { %570 = vsyncpa [#allocation9], 1 }
 0x2a7   :  { %571 = vsyncpa [#allocation4], 1 }

</bundles_post_ra>
